<compile_context>
chip_gen: v7x
topology: tpu7x:2x2x1
jax: 0.10.0
libtpu: 0.0.40
codegen_flags: <defaults>
</compile_context>

<pallas_src>
import functools

import jax
import jax.numpy as jnp
from jax.experimental import pallas as pl
from jax.experimental.pallas import tpu as pltpu

LANE = 128
SUBLANE = 8
# Multiple of 32 so bf16 (16,128) and int8 (32,128) packed-block constraints are also met.
DEFAULT_TILE_ROWS = 2048


def _cdiv(a, b):
    return -(-a // b)


def _round_up(x, m):
    return _cdiv(x, m) * m


def _num_tensorcores():
    """2 on multi-TensorCore chips (v7x, and v4/v5p megacore), else 1."""
    try:
        kind = jax.devices()[0].device_kind.lower()
    except Exception:
        return 1
    if "v7" in kind or "v4" in kind or "v5p" in kind:
        return 2
    return 1
    # Note: on v7x, if plain "parallel" semantics ever fail to shard the leading axis
    # across both TensorCores, switch that axis to pltpu.CORE_PARALLEL.


def _bce_kernel(o_ref, t_ref, out_ref, *, rows_valid, tile_rows, tiles_per_split, hard):
    c = pl.program_id(0)   # "parallel" TensorCore-split axis (size 1 on single-TC chips)
    i = pl.program_id(1)   # "arbitrary" streaming / reduction axis

    @pl.when(i == 0)
    def _():
        out_ref[...] = jnp.zeros((1, SUBLANE, LANE), jnp.float32)

    # Load native-dtype tiles, widen on the VPU (keeps HBM bytes narrow).
    o = o_ref[...].astype(jnp.float32)
    t = t_ref[...].astype(jnp.float32)

    if hard:
        # Hard-target fast path ({0,1} targets): one log per element.
        x = jnp.where(t >= 0.5, o, 1.0 - o)
        loss = -jnp.maximum(jnp.log(x), -100.0)
    else:
        # torch.nn.BCELoss clamps each log term at -100 for numerical stability.
        log_o = jnp.maximum(jnp.log(o), -100.0)
        log_1mo = jnp.maximum(jnp.log(1.0 - o), -100.0)
        loss = -(t * log_o + (1.0 - t) * log_1mo)

    def fold(x):
        # (tile_rows,128) -> (8,128): vreg-wise adds only, no cross-lane reduction.
        return x.reshape(tile_rows // SUBLANE, SUBLANE, LANE).sum(axis=0)

    # UNclamped logical row offset of this tile; index_map clamps the block index, and
    # this unclamped offset is what zeroes the duplicate block (keep the two consistent).
    row0 = (c * tiles_per_split + i) * tile_rows
    is_interior = row0 + tile_rows <= rows_valid

    @pl.when(is_interior)
    def _():
        # Steady state: no iota / mask work.
        out_ref[...] += fold(loss).reshape(1, SUBLANE, LANE)

    @pl.when(jnp.logical_not(is_interior))
    def _():
        # Edge tile (ragged last block / clamped duplicate block): mask garbage rows.
        # Keep the select (NOT arithmetic masking) so NaNs from garbage `o` never leak.
        row_ids = jax.lax.broadcasted_iota(jnp.int32, (tile_rows, LANE), 0) + row0
        masked = jnp.where(row_ids < rows_valid, loss, 0.0)
        out_ref[...] += fold(masked).reshape(1, SUBLANE, LANE)


def bce_loss(output, target, hard_targets=None):
    """output: (N, 1, H, W) probabilities in [0, 1]; target: (N, H, W).

    hard_targets: True  -> use the one-log fast path (targets must be exactly {0,1}).
                  False -> general soft-target path.
                  None  -> auto: fast path only for bool/integer target dtypes.
    """
    o = jnp.squeeze(output, axis=1)   # matches output.squeeze(1)
    t = target                        # widened to f32 inside the kernel

    if hard_targets is None:
        hard = (t.dtype == jnp.bool_) or jnp.issubdtype(t.dtype, jnp.integer)
    else:
        hard = bool(hard_targets)

    n = o.size
    rows_main = n // LANE
    n_main = rows_main * LANE
    tail = n - n_main

    o_flat = o.reshape(-1)
    t_flat = t.reshape(-1)

    total = jnp.float32(0.0)

    if rows_main > 0:
        # Contiguous slice + reshape of the lane-aligned prefix: no extra HBM pass.
        o_main = o_flat[:n_main] if tail else o_flat
        t_main = t_flat[:n_main] if tail else t_flat
        o2 = o_main.reshape(rows_main, LANE)
        t2 = t_main.reshape(rows_main, LANE)

        tile_rows = max(32, min(DEFAULT_TILE_ROWS, _round_up(rows_main, 32)))
        tiles_total = _cdiv(rows_main, tile_rows)
        num_splits = _num_tensorcores() if tiles_total >= 2 else 1
        num_splits = min(num_splits, tiles_total)
        tiles_per_split = _cdiv(tiles_total, num_splits)

        def in_map(c, i):
            # Clamp so the (rare) extra step of the second split never issues a fully
            # out-of-bounds DMA; its contribution is masked to zero inside the kernel.
            return (jnp.minimum(c * tiles_per_split + i, tiles_total - 1), 0)

        kernel = functools.partial(
            _bce_kernel, rows_valid=rows_main, tile_rows=tile_rows,
            tiles_per_split=tiles_per_split, hard=hard)

        partials = pl.pallas_call(
            kernel,
            out_shape=jax.ShapeDtypeStruct((num_splits, SUBLANE, LANE), jnp.float32),
            grid_spec=pltpu.PrefetchScalarGridSpec(
                num_scalar_prefetch=0,
                grid=(num_splits, tiles_per_split),
                in_specs=[
                    pl.BlockSpec((tile_rows, LANE), in_map),
                    pl.BlockSpec((tile_rows, LANE), in_map),
                ],
                # Output block is resident across the "arbitrary" axis -> it is the
                # accumulator; each split owns one (8,128) partial-sum block.
                out_specs=pl.BlockSpec((1, SUBLANE, LANE), lambda c, i: (c, 0, 0)),
            ),
            compiler_params=pltpu.CompilerParams(
                dimension_semantics=("parallel", "arbitrary")),
        )(o2, t2)
        total = total + partials.sum()

    if tail:
        # <128-element ragged tail in plain JAX (avoids a full jnp.pad copy of both inputs).
        o_t = o_flat[n_main:].astype(jnp.float32)
        t_t = t_flat[n_main:].astype(jnp.float32)
        if hard:
            x = jnp.where(t_t >= 0.5, o_t, 1.0 - o_t)
            tail_loss = -jnp.sum(jnp.maximum(jnp.log(x), -100.0))
        else:
            tail_loss = -jnp.sum(
                t_t * jnp.maximum(jnp.log(o_t), -100.0)
                + (1.0 - t_t) * jnp.maximum(jnp.log(1.0 - o_t), -100.0))
        total = total + tail_loss

    # Final tiny cross-lane reduction + mean in plain JAX (at most 2*8*128 + 127 values).
    return total / jnp.float32(n)


if __name__ == "__main__":
    def reference(output, target):
        o = jnp.squeeze(output, axis=1).astype(jnp.float32)
        t = target.astype(jnp.float32)
        return -jnp.mean(
            t * jnp.maximum(jnp.log(o), -100.0)
            + (1.0 - t) * jnp.maximum(jnp.log(1.0 - o), -100.0))

    key = jax.random.PRNGKey(0)

    # (shape, target_dtype, hard_targets flag)
    cases = [
        ((2, 1, 16, 16), jnp.float32, None),     # small, lane-aligned, soft path, partial block
        ((3, 1, 15, 17), jnp.float32, True),     # ragged tail (n % 128 != 0) + hard fast path
        ((2, 1, 512, 512), jnp.bfloat16, None),  # multi-tile streaming, narrow target dtype
        ((2, 1, 512, 512), jnp.float32, True),   # multi-tile streaming, hard fast path
    ]

    for (N, C, H, W), tdt, hard in cases:
        key, k1, k2 = jax.random.split(key, 3)
        logits = jax.random.normal(k1, (N, C, H, W), dtype=jnp.float32)
        output = jax.nn.sigmoid(logits)                              # probabilities in (0, 1)
        target = (jax.random.uniform(k2, (N, H, W)) > 0.5).astype(tdt)

        loss = bce_loss(output, target, hard_targets=hard)
        jax.block_until_ready(loss)

        ref = reference(output, target)
        assert jnp.allclose(loss, ref, rtol=1e-5, atol=1e-6), ((N, C, H, W), str(tdt), hard, loss, ref)

    print("KERNEL_OK")
</pallas_src>

<mosaic_0001>
module attributes {stable_mosaic.version = 11 : i64} {
  func.func @_bce_kernel(%arg0: i32, %arg1: i32, %arg2: memref<32x128xf32, #tpu.memory_space<vmem>>, %arg3: memref<32x128xf32, #tpu.memory_space<vmem>>, %arg4: memref<1x8x128xf32, #tpu.memory_space<vmem>>) attributes {dimension_semantics = [#tpu.dimension_semantics<parallel>, #tpu.dimension_semantics<arbitrary>], iteration_bounds = array<i64: 1, 1>, scalar_prefetch = 0 : i64, scratch_operands = 0 : i64, tpu.core_type = #tpu.core_type<tc>, window_params = [{transform_indices = @transform_0, window_bounds = array<i64: 32, 128>}, {transform_indices = @transform_1, window_bounds = array<i64: 32, 128>}, {transform_indices = @transform_2, window_bounds = array<i64: 1, 8, 128>}]} {
    %c0_i32 = arith.constant 0 : i32
    %0 = arith.cmpi eq, %arg1, %c0_i32 : i32
    %1 = arith.extui %0 : i1 to i32
    %c0_i32_0 = arith.constant 0 : i32
    %2 = arith.cmpi ne, %1, %c0_i32_0 : i32
    scf.if %2 {
      %cst_11 = arith.constant 0.000000e+00 : f32
      %30 = vector.broadcast %cst_11 : f32 to vector<1x8x128xf32>
      %c0_12 = arith.constant 0 : index
      %c0_13 = arith.constant 0 : index
      %c0_14 = arith.constant 0 : index
      %31 = vector.load %arg4[%c0_12, %c0_13, %c0_14] : memref<1x8x128xf32, #tpu.memory_space<vmem>>, vector<1x8x128xf32>
      tpu.vector_store %arg4[%c0_12, %c0_13, %c0_14], %30 {strides = array<i32>} : memref<1x8x128xf32, #tpu.memory_space<vmem>>, vector<1x8x128xf32>,
    } else {
    }
    %c0 = arith.constant 0 : index
    %c0_1 = arith.constant 0 : index
    %3 = vector.load %arg2[%c0, %c0_1] : memref<32x128xf32, #tpu.memory_space<vmem>>, vector<32x128xf32>
    %c0_2 = arith.constant 0 : index
    %c0_3 = arith.constant 0 : index
    %4 = vector.load %arg3[%c0_2, %c0_3] : memref<32x128xf32, #tpu.memory_space<vmem>>, vector<32x128xf32>
    %5 = math.log %3 : vector<32x128xf32>
    %cst = arith.constant -1.000000e+02 : f32
    %6 = vector.broadcast %cst : f32 to vector<32x128xf32>
    %7 = arith.maximumf %5, %6 : vector<32x128xf32>
    %cst_4 = arith.constant 1.000000e+00 : f32
    %8 = vector.broadcast %cst_4 : f32 to vector<32x128xf32>
    %9 = arith.subf %8, %3 : vector<32x128xf32>
    %10 = math.log %9 : vector<32x128xf32>
    %cst_5 = arith.constant -1.000000e+02 : f32
    %11 = vector.broadcast %cst_5 : f32 to vector<32x128xf32>
    %12 = arith.maximumf %10, %11 : vector<32x128xf32>
    %13 = arith.mulf %4, %7 : vector<32x128xf32>
    %cst_6 = arith.constant 1.000000e+00 : f32
    %14 = vector.broadcast %cst_6 : f32 to vector<32x128xf32>
    %15 = arith.subf %14, %4 : vector<32x128xf32>
    %16 = arith.mulf %15, %12 : vector<32x128xf32>
    %17 = arith.addf %13, %16 : vector<32x128xf32>
    %cst_7 = arith.constant 0.000000e+00 : f32
    %18 = vector.broadcast %cst_7 : f32 to vector<32x128xf32>
    %19 = arith.subf %18, %17 : vector<32x128xf32>
    %c1_i32 = arith.constant 1 : i32
    %20 = arith.muli %arg0, %c1_i32 : i32
    %21 = arith.addi %20, %arg1 : i32
    %c32_i32 = arith.constant 32 : i32
    %22 = arith.muli %21, %c32_i32 : i32
    %c32_i32_8 = arith.constant 32 : i32
    %23 = arith.addi %22, %c32_i32_8 : i32
    %c4_i32 = arith.constant 4 : i32
    %24 = arith.cmpi sle, %23, %c4_i32 : i32
    %25 = arith.extui %24 : i1 to i32
    %c0_i32_9 = arith.constant 0 : i32
    %26 = arith.cmpi ne, %25, %c0_i32_9 : i32
    scf.if %26 {
      %c0_11 = arith.constant 0 : index
      %c0_12 = arith.constant 0 : index
      %c0_13 = arith.constant 0 : index
      %30 = vector.load %arg4[%c0_11, %c0_12, %c0_13] : memref<1x8x128xf32, #tpu.memory_space<vmem>>, vector<1x8x128xf32>
      %31 = vector.shape_cast %19 : vector<32x128xf32> to vector<4x8x128xf32>
      %cst_14 = arith.constant dense<0.000000e+00> : vector<8x128xf32>
      %32 = vector.multi_reduction <add>, %31, %cst_14 [0] : vector<4x8x128xf32> to vector<8x128xf32>
      %33 = vector.shape_cast %32 : vector<8x128xf32> to vector<1x8x128xf32>
      %34 = arith.addf %30, %33 : vector<1x8x128xf32>
      %c0_15 = arith.constant 0 : index
      %c0_16 = arith.constant 0 : index
      %c0_17 = arith.constant 0 : index
      %35 = vector.load %arg4[%c0_15, %c0_16, %c0_17] : memref<1x8x128xf32, #tpu.memory_space<vmem>>, vector<1x8x128xf32>
      tpu.vector_store %arg4[%c0_15, %c0_16, %c0_17], %34 {strides = array<i32>} : memref<1x8x128xf32, #tpu.memory_space<vmem>>, vector<1x8x128xf32>,
    } else {
    }
    %true = arith.constant true
    %27 = arith.xori %24, %true : i1
    %28 = arith.extui %27 : i1 to i32
    %c0_i32_10 = arith.constant 0 : i32
    %29 = arith.cmpi ne, %28, %c0_i32_10 : i32
    scf.if %29 {
      %30 = tpu.iota {dimensions = array<i32: 0>} : vector<32x128xi32>
      %31 = vector.broadcast %22 : i32 to vector<32x128xi32>
      %32 = arith.addi %30, %31 : vector<32x128xi32>
      %c4_i32_11 = arith.constant 4 : i32
      %33 = vector.broadcast %c4_i32_11 : i32 to vector<32x128xi32>
      %34 = arith.cmpi slt, %32, %33 : vector<32x128xi32>
      %cst_12 = arith.constant 0.000000e+00 : f32
      %35 = vector.broadcast %cst_12 : f32 to vector<32x128xf32>
      %36 = arith.select %34, %19, %35 : vector<32x128xi1>, vector<32x128xf32>
      %c0_13 = arith.constant 0 : index
      %c0_14 = arith.constant 0 : index
      %c0_15 = arith.constant 0 : index
      %37 = vector.load %arg4[%c0_13, %c0_14, %c0_15] : memref<1x8x128xf32, #tpu.memory_space<vmem>>, vector<1x8x128xf32>
      %38 = vector.shape_cast %36 : vector<32x128xf32> to vector<4x8x128xf32>
      %cst_16 = arith.constant dense<0.000000e+00> : vector<8x128xf32>
      %39 = vector.multi_reduction <add>, %38, %cst_16 [0] : vector<4x8x128xf32> to vector<8x128xf32>
      %40 = vector.shape_cast %39 : vector<8x128xf32> to vector<1x8x128xf32>
      %41 = arith.addf %37, %40 : vector<1x8x128xf32>
      %c0_17 = arith.constant 0 : index
      %c0_18 = arith.constant 0 : index
      %c0_19 = arith.constant 0 : index
      %42 = vector.load %arg4[%c0_17, %c0_18, %c0_19] : memref<1x8x128xf32, #tpu.memory_space<vmem>>, vector<1x8x128xf32>
      tpu.vector_store %arg4[%c0_17, %c0_18, %c0_19], %41 {strides = array<i32>} : memref<1x8x128xf32, #tpu.memory_space<vmem>>, vector<1x8x128xf32>,
    } else {
    }
    return
  }
  func.func @transform_0(%arg0: i32, %arg1: i32) -> (i32, i32) {
    %c1_i32 = arith.constant 1 : i32
    %0 = arith.muli %arg0, %c1_i32 : i32
    %1 = arith.addi %0, %arg1 : i32
    %c0_i32 = arith.constant 0 : i32
    %2 = arith.minsi %1, %c0_i32 : i32
    %c0_i32_0 = arith.constant 0 : i32
    %c0_i32_1 = arith.constant 0 : i32
    return %2, %c0_i32_0 : i32, i32
  }
  func.func @transform_1(%arg0: i32, %arg1: i32) -> (i32, i32) {
    %c1_i32 = arith.constant 1 : i32
    %0 = arith.muli %arg0, %c1_i32 : i32
    %1 = arith.addi %0, %arg1 : i32
    %c0_i32 = arith.constant 0 : i32
    %2 = arith.minsi %1, %c0_i32 : i32
    %c0_i32_0 = arith.constant 0 : i32
    %c0_i32_1 = arith.constant 0 : i32
    return %2, %c0_i32_0 : i32, i32
  }
  func.func @transform_2(%arg0: i32, %arg1: i32) -> (i32, i32, i32) {
    %c0_i32 = arith.constant 0 : i32
    %c0_i32_0 = arith.constant 0 : i32
    %c0_i32_1 = arith.constant 0 : i32
    return %arg0, %c0_i32, %c0_i32_0 : i32, i32, i32
  }
}

</mosaic_0001>

<bundles_post_ra>
// kernel: tpu_custom_call.1
= control target key start
LH: loop header
LB: loop body
LE: loop exit
PB: predicated region body
PF: predicated region fallthrough
CT: control target
= control target key end

     0   :  { %7 = vsyncpa [#allocation3], 0  ;;  %s332_s0 = inlined_call_operand.hbm [shape: f32[4,128], index: 0, kind: input, shape index: {}]   ;;  %s333_s1 = inlined_call_operand.hbm [shape: f32[4,128], index: 1, kind: input, shape index: {}]   ;;  %s334_s2 = inlined_call_operand.hbm [shape: f32[1,8,128], index: 2, kind: output, shape index: {}]  }
   0x1   :  { %8 = vsyncpa [#allocation6], 0 }
   0x2   :  { %9 = vsyncpa [#allocation4], 0 }
   0x3   :  { %20 = vsyncadd [#allocation3], 448  ;;  %s276_s9 = smov [#allocation2]   ;;  %s204_s13 = scalar_lea.hbm %s332_s0, 64 }
   0x4   :  { %s25_s10 = sshll.u32 %s276_s9, 4  ;;  %p205_p0 = scmp.ne.s32.totalorder %s332_s0, %s204_s13  ;;  %s26_s10 = int_to_ptr.vmem [resolvable:$true] %s25_s10 }
   0x5   :  { %p208_p1 = scmp.lt.u32.totalorder %s204_s13, %s332_s0 }
   0x7   :  { %p210_p2 = pnand %p208_p1, %p205_p0 }
   0x9   :  { %213 = shalt.err (!%p210_p2)
}
   0xa   :  { %s214_s18 = scalar_lea.vmem %s26_s10, 64  ;;  %s218_s19 = scalar_lea.vmem %s26_s10, 512 }
   0xb   :  { %p215_p3 = scmp.ne.s32.totalorder %s26_s10, %s214_s18  ;;  %p219_p4 = scmp.lt.s32.totalorder %s26_s10, %s26_s10 }
   0xc   :  { %p220_p5 = scmp.lt.s32.totalorder %s218_s19, %s214_s18 }
   0xe   :  { %p221_p6 = por %p220_p5, %p219_p4 }
  0x10   :  { %p222_p7 = pnand %p221_p6, %p215_p3 }
  0x12   :  { %225 = shalt.err (!%p222_p7)
}
  0x13   :  { %s277_s20 = smov 64   ;;  %s278_s21 = smov 4  }
  0x14   :  { %31 = dma.hbm_to_vmem [thread:$0]  %s332_s0, 64, %s26_s10, [#allocation3], %s277_s20, %s277_s20, %s278_s21  }
  0x15   :  { %42 = vsyncadd [#allocation6], 448  ;;  %s279_s24 = smov [#allocation5]   ;;  %s226_s28 = scalar_lea.hbm %s333_s1, 64 }
  0x16   :  { %s47_s25 = sshll.u32 %s279_s24, 4  ;;  %p227_p8 = scmp.ne.s32.totalorder %s333_s1, %s226_s28  ;;  %s48_s25 = int_to_ptr.vmem [resolvable:$true] %s47_s25 }
  0x17   :  { %p230_p9 = scmp.lt.u32.totalorder %s226_s28, %s333_s1 }
  0x19   :  { %p232_p10 = pnand %p230_p9, %p227_p8 }
  0x1b   :  { %235 = shalt.err (!%p232_p10)
}
  0x1c   :  { %s236_s5 = scalar_lea.vmem %s48_s25, 64  ;;  %s240_s0 = scalar_lea.vmem %s48_s25, 512 }
  0x1d   :  { %p237_p11 = scmp.ne.s32.totalorder %s48_s25, %s236_s5  ;;  %p241_p12 = scmp.lt.s32.totalorder %s48_s25, %s48_s25 }
  0x1e   :  { %p242_p13 = scmp.lt.s32.totalorder %s240_s0, %s236_s5 }
  0x20   :  { %p243_p0 = por %p242_p13, %p241_p12 }
  0x22   :  { %p244_p1 = pnand %p243_p0, %p237_p11 }
  0x24   :  { %247 = shalt.err (!%p244_p1)
}
  0x25   :  { %53 = dma.hbm_to_vmem [thread:$0]  %s333_s1, 64, %s48_s25, [#allocation6], %s277_s20, %s277_s20, %s278_s21  }
  0x26   :  { %270 = dma.done.wait [#allocation3], 512  }
  0x27   :  { %271 = vsyncadd [#allocation3], 4294966784 }
  0x28   :  { %272 = dma.done.wait [#allocation6], 512  }
  0x29   :  { %273 = vsyncadd [#allocation6], 4294966784  ;;  %v77_v0 = vld [vmem:[#allocation2] sm:$0xff]  ;;  %v150_v6 = vlaneseq  ;;  %s280_s1 = smov [#allocation7]  }
  0x2a   :  { %200 = vlog2.f32 %v77_v0  ;;  %v97_v1 = vsub.f32 1.0, %v77_v0  ;;  %v81_v3 = vld [vmem:[#allocation5] sm:$0xff]  ;;  %s180_s8 = sshll.u32 %s280_s1, 4  ;;  %s181_s8 = int_to_ptr.vmem [resolvable:$true] %s180_s8 }
  0x2b   :  { %v117_v9 = vsub.f32 1.0, %v81_v3  ;;  %v151_v12 = vshrl.u32 %v150_v6, 7  ;;  %s248_s9 = scalar_lea.vmem %s181_s8, 128  ;;  %p253_p3 = scmp.lt.s32.totalorder %s181_s8, %s181_s8 }
  0x2c   :  { %202 = vlog2.f32 %v97_v1  ;;  %p249_p2 = scmp.ne.s32.totalorder %s181_s8, %s248_s9  ;;  %p254_p4 = scmp.lt.s32.totalorder %s248_s9, %s248_s9 }
  0x2d   :  { %vm160_vm0 = vcmp.lt.s32.totalorder %v151_v12, 4 }
  0x2e   :  { %p255_p5 = por %p254_p4, %p253_p3 }
  0x30   :  { %p256_p6 = pnand %p255_p5, %p249_p2 }
  0x34   :  { %v201_v2 = vpop.eup %200 }
  0x35   :  { %v86_v4 = vmul.f32 0.6931472, %v201_v2 }
  0x36   :  { %v203_v5 = vpop.eup %202 }
  0x37   :  { %v93_v7 = vmax.f32 %v86_v4, -100.0  ;;  %v102_v8 = vmul.f32 0.6931472, %v203_v5 }
  0x39   :  { %v109_v10 = vmax.f32 %v102_v8, -100.0  ;;  %v113_v11 = vmul.f32 %v93_v7, %v81_v3 }
  0x3b   :  { %v121_v13 = vmul.f32 %v117_v9, %v109_v10 }
  0x3d   :  { %v125_v14 = vadd.f32 %v121_v13, %v113_v11 }
  0x3f   :  { %v129_v15 = vsub.f32 0.0, %v125_v14 }
  0x41   :  { %v164_v16 = vsel %vm160_vm0, %v129_v15, 0.0 }
  0x42   :  { %173 = vst [vmem:[#allocation7] sm:$0xff] %v164_v16 }
  0x43   :  { %259 = shalt.err (!%p256_p6)
}
  0x44   :  { %s260_s12 = scalar_lea.hbm %s334_s2, 128 }
  0x45   :  { %p261_p7 = scmp.ne.s32.totalorder %s334_s2, %s260_s12  ;;  %p264_p8 = scmp.lt.u32.totalorder %s260_s12, %s334_s2 }
  0x47   :  { %p266_p9 = pnand %p264_p8, %p261_p7 }
  0x49   :  { %269 = shalt.err (!%p266_p9)
}
  0x4a   :  { %183 = dma.vmem_to_hbm [thread:$0]  %s181_s8, 128, %s334_s2, [#allocation4]  }
  0x4b   :  { %274 = dma.done.wait [#allocation4], 128  }
  0x4c   :  { %275 = vsyncadd [#allocation4], 4294967168 }
  0x4d   :  { %187 = vsyncpa [#allocation3], 1 }
  0x4e   :  { %188 = vsyncpa [#allocation6], 1 }
  0x4f   :  { %189 = vsyncpa [#allocation4], 1 }

</bundles_post_ra>
